<compile_context>
chip_gen: v7x
topology: tpu7x:2x2x1
jax: 0.10.0
libtpu: 0.0.40
codegen_flags: <defaults>
</compile_context>

<pallas_src>
import jax
import jax.numpy as jnp
from jax.experimental import pallas as pl
from jax.experimental.pallas import tpu as pltpu

IN_FEATURES = 784
IN_PAD = 896          # 784 padded to 7*128 (full-width MXU K passes)
N_CLASSES = 10
OUT_PAD = 128         # lane-dense logits tile
MASK_NEG = -1e30      # plain Python float -> not a captured traced constant


def net_kernel(x_ref, w1_ref, b1_ref, w2_ref, b2_ref, o_ref):
    # fc1: bf16 MXU inputs, f32 accumulate; bias + relu in f32 (VPU).
    h = jnp.dot(x_ref[...], w1_ref[...], preferred_element_type=jnp.float32)
    h = jnp.maximum(h + b1_ref[...], 0.0)

    # dropout (eval mode) == identity

    # fc2: cast the f32 relu output back to bf16 for the MXU; 128-lane padded N.
    logits = jnp.dot(h.astype(jnp.bfloat16), w2_ref[...],
                     preferred_element_type=jnp.float32)
    logits = logits + b2_ref[...]

    # Mask the 118 padding lanes so they never affect max / exp-sum.
    lane = jax.lax.broadcasted_iota(jnp.int32, logits.shape, 1)
    logits = jnp.where(lane < N_CLASSES, logits, MASK_NEG)

    # Numerically stable log_softmax over the (masked) 128-lane tile.
    m = jnp.max(logits, axis=1, keepdims=True)
    shifted = logits - m
    lse = jnp.log(jnp.sum(jnp.exp(shifted), axis=1, keepdims=True))
    o_ref[...] = (shifted - lse).astype(o_ref.dtype)


def net_forward(x, w1, b1, w2, b2):
    """x: any shape with trailing dims multiplying to 784 (e.g. (B,1,28,28)).
    w1: (784, H), b1: (1, H), w2: (H, 10), b2: (1, 10) — PyTorch-equivalent
    (weights already transposed to (in, out))."""
    H = w1.shape[1]

    # Flatten, cast matmul operands to bf16, zero-pad K 784 -> 896.
    xf = x.reshape(-1, IN_FEATURES).astype(jnp.bfloat16)
    B = xf.shape[0]
    xf = jnp.pad(xf, ((0, 0), (0, IN_PAD - IN_FEATURES)))

    # Batch tile: full (8-padded) batch for small B, 256 rows otherwise.
    TB = min(256, ((B + 7) // 8) * 8)
    Bp = pl.cdiv(B, TB) * TB
    if Bp != B:
        xf = jnp.pad(xf, ((0, Bp - B), (0, 0)))

    # Pad weights: w1 gets zero K-rows, w2/b2 get zero output lanes (one-time,
    # outside the kernel).
    w1p = jnp.pad(w1.astype(jnp.bfloat16), ((0, IN_PAD - IN_FEATURES), (0, 0)))
    w2p = jnp.pad(w2.astype(jnp.bfloat16), ((0, 0), (0, OUT_PAD - N_CLASSES)))
    b1p = b1.astype(jnp.float32)
    b2p = jnp.pad(b2.astype(jnp.float32), ((0, 0), (0, OUT_PAD - N_CLASSES)))

    out_padded = pl.pallas_call(
        net_kernel,
        out_shape=jax.ShapeDtypeStruct((Bp, OUT_PAD), jnp.float32),
        grid_spec=pl.GridSpec(
            grid=(Bp // TB,),
            in_specs=[
                pl.BlockSpec((TB, IN_PAD), lambda i: (i, 0)),   # x tile
                pl.BlockSpec((IN_PAD, H), lambda i: (0, 0)),    # w1 (resident)
                pl.BlockSpec((1, H), lambda i: (0, 0)),         # b1 (resident)
                pl.BlockSpec((H, OUT_PAD), lambda i: (0, 0)),   # w2 (resident)
                pl.BlockSpec((1, OUT_PAD), lambda i: (0, 0)),   # b2 (resident)
            ],
            out_specs=pl.BlockSpec((TB, OUT_PAD), lambda i: (i, 0)),
        ),
        compiler_params=pltpu.CompilerParams(
            dimension_semantics=("parallel",),   # megacore-shardable on v7x
        ),
    )(xf, w1p, b1p, w2p, b2p)

    return out_padded[:B, :N_CLASSES]


def init_params(key, hidden_size=128):
    """Deterministic init; weights kept as (in, out) so kernel does x @ W."""
    k1, k2, k3, k4 = jax.random.split(key, 4)
    bound1 = 1.0 / jnp.sqrt(784.0)
    bound2 = 1.0 / jnp.sqrt(float(hidden_size))
    w1 = jax.random.uniform(k1, (784, hidden_size), jnp.float32, -bound1, bound1)
    b1 = jax.random.uniform(k2, (1, hidden_size), jnp.float32, -bound1, bound1)
    w2 = jax.random.uniform(k3, (hidden_size, 10), jnp.float32, -bound2, bound2)
    b2 = jax.random.uniform(k4, (1, 10), jnp.float32, -bound2, bound2)
    return w1, b1, w2, b2


if __name__ == "__main__":
    key = jax.random.PRNGKey(0)
    kx, kp = jax.random.split(key)

    hidden_size = 128
    batch = 8
    # MNIST-like input: (B, 1, 28, 28) -> flattened to (B, 784) inside forward
    x = jax.random.normal(kx, (batch, 1, 28, 28), jnp.float32)

    w1, b1, w2, b2 = init_params(kp, hidden_size)

    out = net_forward(x, w1, b1, w2, b2)
    out = jax.block_until_ready(out)

    # Cross-check against a plain-JAX f32 reference of the same math.
    xf = x.reshape(-1, 784)
    h = jnp.maximum(xf @ w1 + b1, 0.0)
    logits = h @ w2 + b2
    ref = jax.nn.log_softmax(logits, axis=1)
    assert out.shape == (batch, 10)
    # bf16 matmul inputs (f32 accumulate) -> slightly looser tolerance vs f32 ref.
    assert jnp.allclose(out, ref, atol=2e-2, rtol=2e-2)

    print("KERNEL_OK")
</pallas_src>

<mosaic_0001>
module attributes {stable_mosaic.version = 11 : i64} {
  func.func @net_kernel(%arg0: i32, %arg1: memref<8x896xbf16, #tpu.memory_space<vmem>>, %arg2: memref<896x128xbf16, #tpu.memory_space<vmem>>, %arg3: memref<1x128xf32, #tpu.memory_space<vmem>>, %arg4: memref<128x128xbf16, #tpu.memory_space<vmem>>, %arg5: memref<1x128xf32, #tpu.memory_space<vmem>>, %arg6: memref<8x128xf32, #tpu.memory_space<vmem>>) attributes {dimension_semantics = [#tpu.dimension_semantics<parallel>], iteration_bounds = array<i64: 1>, scalar_prefetch = 0 : i64, scratch_operands = 0 : i64, tpu.core_type = #tpu.core_type<tc>, window_params = [{transform_indices = @transform_0, window_bounds = array<i64: 8, 896>}, {pipeline_mode = #tpu.pipeline_mode<synchronous>, transform_indices = @transform_1, window_bounds = array<i64: 896, 128>}, {pipeline_mode = #tpu.pipeline_mode<synchronous>, transform_indices = @transform_2, window_bounds = array<i64: 1, 128>}, {pipeline_mode = #tpu.pipeline_mode<synchronous>, transform_indices = @transform_3, window_bounds = array<i64: 128, 128>}, {pipeline_mode = #tpu.pipeline_mode<synchronous>, transform_indices = @transform_4, window_bounds = array<i64: 1, 128>}, {transform_indices = @transform_5, window_bounds = array<i64: 8, 128>}]} {
    %c0 = arith.constant 0 : index
    %c0_0 = arith.constant 0 : index
    %0 = vector.load %arg1[%c0, %c0_0] : memref<8x896xbf16, #tpu.memory_space<vmem>>, vector<8x896xbf16>
    %c0_1 = arith.constant 0 : index
    %c0_2 = arith.constant 0 : index
    %1 = vector.load %arg2[%c0_1, %c0_2] : memref<896x128xbf16, #tpu.memory_space<vmem>>, vector<896x128xbf16>
    %cst = arith.constant dense<0.000000e+00> : vector<8x128xf32>
    %2 = tpu.matmul %0, %1, %cst {dimension_numbers = #tpu.dot_dimension_numbers<[1], [0], [0], [1], [0, 0, 1, 1], [], []>} : vector<8x896xbf16>, vector<896x128xbf16>, vector<8x128xf32> -> vector<8x128xf32>
    %c0_3 = arith.constant 0 : index
    %c0_4 = arith.constant 0 : index
    %3 = vector.load %arg3[%c0_3, %c0_4] : memref<1x128xf32, #tpu.memory_space<vmem>>, vector<1x128xf32>
    %4 = vector.broadcast %3 : vector<1x128xf32> to vector<8x128xf32>
    %5 = arith.addf %2, %4 : vector<8x128xf32>
    %cst_5 = arith.constant 0.000000e+00 : f32
    %6 = vector.broadcast %cst_5 : f32 to vector<8x128xf32>
    %7 = arith.maximumf %5, %6 : vector<8x128xf32>
    %8 = arith.truncf %7 : vector<8x128xf32> to vector<8x128xbf16>
    %c0_6 = arith.constant 0 : index
    %c0_7 = arith.constant 0 : index
    %9 = vector.load %arg4[%c0_6, %c0_7] : memref<128x128xbf16, #tpu.memory_space<vmem>>, vector<128x128xbf16>
    %cst_8 = arith.constant dense<0.000000e+00> : vector<8x128xf32>
    %10 = tpu.matmul %8, %9, %cst_8 {dimension_numbers = #tpu.dot_dimension_numbers<[1], [0], [0], [1], [0, 0, 1, 1], [], []>} : vector<8x128xbf16>, vector<128x128xbf16>, vector<8x128xf32> -> vector<8x128xf32>
    %c0_9 = arith.constant 0 : index
    %c0_10 = arith.constant 0 : index
    %11 = vector.load %arg5[%c0_9, %c0_10] : memref<1x128xf32, #tpu.memory_space<vmem>>, vector<1x128xf32>
    %12 = vector.broadcast %11 : vector<1x128xf32> to vector<8x128xf32>
    %13 = arith.addf %10, %12 : vector<8x128xf32>
    %14 = tpu.iota {dimensions = array<i32: 1>} : vector<8x128xi32>
    %c10_i32 = arith.constant 10 : i32
    %15 = vector.broadcast %c10_i32 : i32 to vector<8x128xi32>
    %16 = arith.cmpi slt, %14, %15 : vector<8x128xi32>
    %cst_11 = arith.constant -1.000000e+30 : f32
    %17 = vector.broadcast %cst_11 : f32 to vector<8x128xf32>
    %18 = arith.select %16, %13, %17 : vector<8x128xi1>, vector<8x128xf32>
    %cst_12 = arith.constant dense<0xFF800000> : vector<8xf32>
    %19 = vector.multi_reduction <maximumf>, %18, %cst_12 [1] : vector<8x128xf32> to vector<8xf32>
    %20 = vector.shape_cast %19 : vector<8xf32> to vector<8x1xf32>
    %21 = vector.broadcast %20 : vector<8x1xf32> to vector<8x128xf32>
    %22 = arith.subf %18, %21 : vector<8x128xf32>
    %23 = math.exp %22 : vector<8x128xf32>
    %cst_13 = arith.constant dense<0.000000e+00> : vector<8xf32>
    %24 = vector.multi_reduction <add>, %23, %cst_13 [1] : vector<8x128xf32> to vector<8xf32>
    %25 = vector.shape_cast %24 : vector<8xf32> to vector<8x1xf32>
    %26 = math.log %25 : vector<8x1xf32>
    %27 = vector.broadcast %26 : vector<8x1xf32> to vector<8x128xf32>
    %28 = arith.subf %22, %27 : vector<8x128xf32>
    %c0_14 = arith.constant 0 : index
    %c0_15 = arith.constant 0 : index
    %29 = vector.load %arg6[%c0_14, %c0_15] : memref<8x128xf32, #tpu.memory_space<vmem>>, vector<8x128xf32>
    tpu.vector_store %arg6[%c0_14, %c0_15], %28 {strides = array<i32>} : memref<8x128xf32, #tpu.memory_space<vmem>>, vector<8x128xf32>,
    return
  }
  func.func @transform_0(%arg0: i32) -> (i32, i32) {
    %c0_i32 = arith.constant 0 : i32
    %c0_i32_0 = arith.constant 0 : i32
    return %arg0, %c0_i32 : i32, i32
  }
  func.func @transform_1(%arg0: i32) -> (i32, i32) {
    %c0_i32 = arith.constant 0 : i32
    %c0_i32_0 = arith.constant 0 : i32
    %c0_i32_1 = arith.constant 0 : i32
    return %c0_i32, %c0_i32_0 : i32, i32
  }
  func.func @transform_2(%arg0: i32) -> (i32, i32) {
    %c0_i32 = arith.constant 0 : i32
    %c0_i32_0 = arith.constant 0 : i32
    %c0_i32_1 = arith.constant 0 : i32
    return %c0_i32, %c0_i32_0 : i32, i32
  }
  func.func @transform_3(%arg0: i32) -> (i32, i32) {
    %c0_i32 = arith.constant 0 : i32
    %c0_i32_0 = arith.constant 0 : i32
    %c0_i32_1 = arith.constant 0 : i32
    return %c0_i32, %c0_i32_0 : i32, i32
  }
  func.func @transform_4(%arg0: i32) -> (i32, i32) {
    %c0_i32 = arith.constant 0 : i32
    %c0_i32_0 = arith.constant 0 : i32
    %c0_i32_1 = arith.constant 0 : i32
    return %c0_i32, %c0_i32_0 : i32, i32
  }
  func.func @transform_5(%arg0: i32) -> (i32, i32) {
    %c0_i32 = arith.constant 0 : i32
    %c0_i32_0 = arith.constant 0 : i32
    return %arg0, %c0_i32 : i32, i32
  }
}

</mosaic_0001>

<bundles_post_ra>
// kernel: tpu_custom_call.1
= control target key start
LH: loop header
LB: loop body
LE: loop exit
PB: predicated region body
PF: predicated region fallthrough
CT: control target
= control target key end

     0   :  { %10 = vsyncpa [#allocation3], 0  ;;  %s1341_s0 = inlined_call_operand.hbm [shape: bf16[8,896], index: 0, kind: input, shape index: {}]   ;;  %s1342_s1 = inlined_call_operand.hbm [shape: bf16[896,128], index: 1, kind: input, shape index: {}]   ;;  %s1343_s2 = inlined_call_operand.vmem [shape: f32[1,128], index: 2, kind: input, shape index: {}]   ;;  %s1344_s3 = inlined_call_operand.hbm [shape: bf16[128,128], index: 3, kind: input, shape index: {}]   ;;  %s1345_s4 = inlined_call_operand.vmem [shape: f32[1,128], index: 4, kind: input, shape index: {}]   ;;  %s1346_s5 = inlined_call_operand.hbm [shape: f32[8,128], index: 5, kind: output, shape index: {}]  }
   0x1   :  { %11 = vsyncpa [#allocation6], 0 }
   0x2   :  { %12 = vsyncpa [#allocation4], 0  ;;  %s1223_s18 = smov [#allocation5]   ;;  %s1129_s22 = scalar_lea.hbm %s1342_s1, 7168 }
   0x3   :  { %s28_s19 = sshll.u32 %s1223_s18, 4  ;;  %p1130_p0 = scmp.ne.s32.totalorder %s1342_s1, %s1129_s22  ;;  %s29_s19 = int_to_ptr.vmem [resolvable:$true] %s28_s19 }
   0x4   :  { %p1133_p1 = scmp.lt.u32.totalorder %s1129_s22, %s1342_s1 }
   0x6   :  { %p1135_p2 = pnand %p1133_p1, %p1130_p0 }
   0x8   :  { %1138 = shalt.err (!%p1135_p2)
}
   0x9   :  { %s1139_s27 = scalar_lea.vmem %s29_s19, 7168  ;;  %p1144_p4 = scmp.lt.s32.totalorder %s29_s19, %s29_s19 }
   0xa   :  { %p1140_p3 = scmp.ne.s32.totalorder %s29_s19, %s1139_s27  ;;  %p1145_p5 = scmp.lt.s32.totalorder %s1139_s27, %s1139_s27 }
   0xc   :  { %p1146_p6 = por %p1145_p5, %p1144_p4 }
   0xe   :  { %p1147_p7 = pnand %p1146_p6, %p1140_p3 }
  0x10   :  { %1150 = shalt.err (!%p1147_p7)
}
  0x11   :  { %s1224_s28 = smov 64   ;;  %s1225_s29 = smov 4  }
  0x12   :  { %34 = dma.hbm_to_vmem [thread:$0]  %s1342_s1, 7168, %s29_s19, [#allocation6], %s1224_s28, %s1224_s28, %s1225_s29  }
  0x13   :  { %s1226_s7 = smov [#allocation2]   ;;  %s1227_s9 = smov [#allocation7]  }
  0x14   :  { %s19_s8 = sshll.u32 %s1226_s7, 4  ;;  %s42_s10 = sshll.u32 %s1227_s9, 4  ;;  %s20_s8 = int_to_ptr.vmem [resolvable:$true] %s19_s8  ;;  %s43_s10 = int_to_ptr.vmem [resolvable:$true] %s42_s10 }
  0x15   :  { %s1151_s13 = scalar_lea.hbm %s1341_s0, 448 }
  0x16   :  { %p1152_p8 = scmp.ne.s32.totalorder %s1341_s0, %s1151_s13  ;;  %p1155_p9 = scmp.lt.u32.totalorder %s1151_s13, %s1341_s0 }
  0x18   :  { %p1157_p10 = pnand %p1155_p9, %p1152_p8 }
  0x1a   :  { %1160 = shalt.err (!%p1157_p10)
}
  0x1b   :  { %s1161_s1 = scalar_lea.vmem %s20_s8, 448  ;;  %p1166_p12 = scmp.lt.s32.totalorder %s20_s8, %s20_s8 }
  0x1c   :  { %p1162_p11 = scmp.ne.s32.totalorder %s20_s8, %s1161_s1  ;;  %p1167_p13 = scmp.lt.s32.totalorder %s1161_s1, %s1161_s1 }
  0x1e   :  { %p1168_p0 = por %p1167_p13, %p1166_p12 }
  0x20   :  { %p1169_p1 = pnand %p1168_p0, %p1162_p11 }
  0x22   :  { %1172 = shalt.err (!%p1169_p1)
}
  0x23   :  { %22 = dma.hbm_to_vmem [thread:$0]  %s1341_s0, 448, %s20_s8, [#allocation3]  }
  0x24   :  { %s1173_s22 = scalar_lea.hbm %s1344_s3, 1024 }
  0x25   :  { %p1174_p2 = scmp.ne.s32.totalorder %s1344_s3, %s1173_s22  ;;  %p1177_p3 = scmp.lt.u32.totalorder %s1173_s22, %s1344_s3 }
  0x27   :  { %p1179_p4 = pnand %p1177_p3, %p1174_p2 }
  0x29   :  { %1182 = shalt.err (!%p1179_p4)
}
  0x2a   :  { %s1183_s27 = scalar_lea.vmem %s43_s10, 1024  ;;  %p1188_p6 = scmp.lt.s32.totalorder %s43_s10, %s43_s10 }
  0x2b   :  { %p1184_p5 = scmp.ne.s32.totalorder %s43_s10, %s1183_s27  ;;  %p1189_p7 = scmp.lt.s32.totalorder %s1183_s27, %s1183_s27 }
  0x2d   :  { %p1190_p8 = por %p1189_p7, %p1188_p6 }
  0x2f   :  { %p1191_p9 = pnand %p1190_p8, %p1184_p5 }
  0x31   :  { %1194 = shalt.err (!%p1191_p9)
}
  0x32   :  { %48 = dma.hbm_to_vmem [thread:$0]  %s1344_s3, 1024, %s43_s10, [#allocation6], %s1224_s28, %s1224_s28, %s1225_s29  }
  0x33   :  { %1217 = dma.done.wait [#allocation3], 448  }
  0x34   :  { %1218 = vsyncadd [#allocation3], 4294966848 }
  0x35   :  { %1219 = dma.done.wait [#allocation6], 8192  }
  0x36   :  { %1220 = vsyncadd [#allocation6], 4294959104  ;;  %v1054_v0 = vld [vmem:[#allocation5 + $0x40] sm:$0xff]   ;;  %v1058_v4 = vld [vmem:[#allocation5 + $0x48] sm:$0xff]   ;;  %v1228_v42 = vmov 0.0   ;;  %vm1229_vm0 = vmmov 0  }
  0x37   :  { %v1055_v1 = vld [vmem:[#allocation5] sm:$0xff]   ;;  %922 = vmatprep.subr.bf16.mxu0 %v1054_v0  ;;  %v1059_v5 = vld [vmem:[#allocation5 + $0x8] sm:$0xff]   ;;  %v1062_v8 = vld [vmem:[#allocation5 + $0x50] sm:$0xff]   ;;  %s1230_s6 = smov [#allocation8]  }
  0x38   :  { %v1056_v2 = vld [vmem:[#allocation5 + $0xc0] sm:$0xff]   ;;  %923 = vmatpush3.bf16.msra.mxu0 %v1055_v1  ;;  %v1060_v6 = vld [vmem:[#allocation5 + $0xc8] sm:$0xff]   ;;  %v1063_v9 = vld [vmem:[#allocation5 + $0x10] sm:$0xff]   ;;  %s839_s7 = sshll.u32 %s1230_s6, 4  ;;  %s840_s7 = int_to_ptr.vmem [resolvable:$true] %s839_s7 }
  0x39   :  { %v1057_v3 = vld [vmem:[#allocation5 + $0x80] sm:$0xff]   ;;  %944 = vmatprep.subr.bf16.mxu1 %v1056_v2  ;;  %924 = vmatprep.subr.bf16.mxu0 %v1058_v4  ;;  %v1061_v7 = vld [vmem:[#allocation5 + $0x88] sm:$0xff]   ;;  %v1064_v10 = vld [vmem:[#allocation5 + $0xd0] sm:$0xff]   ;;  %p1200_p11 = scmp.lt.s32.totalorder %s840_s7, %s840_s7 }
  0x3a   :  { %945 = vmatpush3.bf16.msra.mxu1 %v1057_v3  ;;  %v1065_v11 = vld [vmem:[#allocation5 + $0x90] sm:$0xff]   ;;  %v1066_v12 = vld [vmem:[#allocation5 + $0x58] sm:$0xff]   ;;  %v1070_v16 = vld [vmem:[#allocation5 + $0x60] sm:$0xff]  }
  0x3b   :  { %946 = vmatprep.subr.bf16.mxu1 %v1060_v6  ;;  %v1067_v13 = vld [vmem:[#allocation5 + $0x18] sm:$0xff]   ;;  %v1071_v17 = vld [vmem:[#allocation5 + $0x20] sm:$0xff]   ;;  %v1074_v20 = vld [vmem:[#allocation5 + $0x68] sm:$0xff]  }
  0x3c   :  { %925 = vmatpush3.bf16.msra.mxu0 %v1059_v5  ;;  %v1068_v14 = vld [vmem:[#allocation5 + $0xd8] sm:$0xff]   ;;  %v1072_v18 = vld [vmem:[#allocation5 + $0xe0] sm:$0xff]   ;;  %v1075_v21 = vld [vmem:[#allocation5 + $0x28] sm:$0xff]  }
  0x3d   :  { %926 = vmatprep.subr.bf16.mxu0 %v1062_v8  ;;  %v1069_v15 = vld [vmem:[#allocation5 + $0x98] sm:$0xff]   ;;  %v1073_v19 = vld [vmem:[#allocation5 + $0xa0] sm:$0xff]   ;;  %v1076_v22 = vld [vmem:[#allocation5 + $0xe8] sm:$0xff]  }
  0x3e   :  { %947 = vmatpush3.bf16.msra.mxu1 %v1061_v7  ;;  %v1077_v23 = vld [vmem:[#allocation5 + $0xa8] sm:$0xff]   ;;  %v1078_v24 = vld [vmem:[#allocation5 + $0x70] sm:$0xff]   ;;  %v1082_v28 = vld [vmem:[#allocation5 + $0x78] sm:$0xff]  }
  0x3f   :  { %948 = vmatprep.subr.bf16.mxu1 %v1064_v10  ;;  %v1079_v25 = vld [vmem:[#allocation5 + $0x30] sm:$0xff]   ;;  %v1083_v29 = vld [vmem:[#allocation5 + $0x38] sm:$0xff]   ;;  %v61_v31 = vld [vmem:[#allocation2] sm:$0xff] }
  0x40   :  { %927 = vmatpush3.bf16.msra.mxu0 %v1063_v9  ;;  %v1080_v26 = vld [vmem:[#allocation5 + $0xf0] sm:$0xff]   ;;  %v1084_v30 = vld [vmem:[#allocation5 + $0xf8] sm:$0xff]   ;;  %v850_v32 = vcombine.low %v61_v31, %v61_v31  ;;  %v851_v33 = vcombine.high %v61_v31, %v61_v31  ;;  %v1088_v35 = vld [vmem:[#allocation5 + $0x140] sm:$0xff]  }
  0x41   :  { %928 = vmatprep.subr.bf16.mxu0 %v1066_v12  ;;  %v1081_v27 = vld [vmem:[#allocation5 + $0xb0] sm:$0xff]   ;;  %v1087_v34 = vld [vmem:[#allocation5 + $0xb8] sm:$0xff]   ;;  %v1091_v39 = vld [vmem:[#allocation5 + $0x100] sm:$0xff]  }
  0x42   :  { %949 = vmatpush3.bf16.msra.mxu1 %v1065_v11  ;;  %v62_v36 = vld [vmem:[#allocation2 + $0x8] sm:$0xff]  ;;  %577 = vmatprep.mubr.bf16.mxu0 %v851_v33  ;;  %v1092_v40 = vld [vmem:[#allocation5 + $0x180] sm:$0xff]   ;;  %v1099_v48 = vld [vmem:[#allocation5 + $0x158] sm:$0xff]  }
  0x43   :  { %950 = vmatprep.subr.bf16.mxu1 %v1068_v14  ;;  %v852_v37 = vcombine.low %v62_v36, %v62_v36  ;;  %v853_v38 = vcombine.high %v62_v36, %v62_v36  ;;  %v1093_v41 = vld [vmem:[#allocation5 + $0x148] sm:$0xff]   ;;  %v1096_v45 = vld [vmem:[#allocation5 + $0x150] sm:$0xff]   ;;  %v1100_v49 = vld [vmem:[#allocation5 + $0x118] sm:$0xff]  }
  0x44   :  { %929 = vmatpush3.bf16.msra.mxu0 %v1067_v13  ;;  %v1094_v43 = vld [vmem:[#allocation5 + $0x108] sm:$0xff]   ;;  %v1097_v46 = vld [vmem:[#allocation5 + $0x110] sm:$0xff]   ;;  %v1102_v50 = vld [vmem:[#allocation5 + $0x160] sm:$0xff]  }
  0x45   :  { %930 = vmatprep.subr.bf16.mxu0 %v1070_v16  ;;  %617 = vmatprep.mubr.bf16.mxu1 %v853_v38  ;;  %v1095_v44 = vld [vmem:[#allocation5 + $0x188] sm:$0xff]   ;;  %v1098_v47 = vld [vmem:[#allocation5 + $0x190] sm:$0xff]   ;;  %v1101_v51 = vld [vmem:[#allocation5 + $0x198] sm:$0xff]  }
  0x46   :  { %951 = vmatpush3.bf16.msra.mxu1 %v1069_v15  ;;  %v1103_v52 = vld [vmem:[#allocation5 + $0x120] sm:$0xff]   ;;  %v1105_v53 = vld [vmem:[#allocation5 + $0x168] sm:$0xff]   ;;  %v1108_v56 = vld [vmem:[#allocation5 + $0x170] sm:$0xff]  }
  0x47   :  { %952 = vmatprep.subr.bf16.mxu1 %v1072_v18  ;;  %v1104_v54 = vld [vmem:[#allocation5 + $0x1a0] sm:$0xff]   ;;  %v1106_v55 = vld [vmem:[#allocation5 + $0x128] sm:$0xff]   ;;  %v1109_v58 = vld [vmem:[#allocation5 + $0x130] sm:$0xff]  }
  0x48   :  { %931 = vmatpush3.bf16.msra.mxu0 %v1071_v17  ;;  %v1107_v57 = vld [vmem:[#allocation5 + $0x1a8] sm:$0xff]   ;;  %v63_v59 = vld [vmem:[#allocation2 + $0x10] sm:$0xff]  ;;  %v1116_v2 = vld [vmem:[#allocation2 + $0x18] ss:$0 sps:$4 sm:$0xff]  }
  0x49   :  { %932 = vmatprep.subr.bf16.mxu0 %v1074_v20  ;;  %v1110_v60 = vld [vmem:[#allocation5 + $0x1b0] sm:$0xff]   ;;  %v855_v61 = vcombine.high %v63_v59, %v63_v59  ;;  %v1111_v62 = vld [vmem:[#allocation5 + $0x178] sm:$0xff]   ;;  %v854_v1 = vcombine.low %v63_v59, %v63_v59  ;;  %v1117_v3 = vld [vmem:[#allocation7] sm:$0xff]  }
  0x4a   :  { %953 = vmatpush3.bf16.msra.mxu1 %v1073_v19  ;;  %v1112_v63 = vld [vmem:[#allocation5 + $0x138] sm:$0xff]   ;;  %v1118_v4 = vld [vmem:[#allocation7 + $0x8] sm:$0xff]   ;;  %v1119_v5 = vld [vmem:[#allocation7 + $0x10] sm:$0xff]  }
  0x4b   :  { %954 = vmatprep.subr.bf16.mxu1 %v1076_v22  ;;  %v1115_v0 = vld [vmem:[#allocation5 + $0x1b8] sm:$0xff]   ;;  %v1121_v7 = vld [vmem:[#allocation7 + $0x20] sm:$0xff]   ;;  %v1122_v8 = vld [vmem:[#allocation7 + $0x28] sm:$0xff]  }
  0x4c   :  { %933 = vmatpush3.bf16.msra.mxu0 %v1075_v21  ;;  %v1120_v6 = vld [vmem:[#allocation7 + $0x18] sm:$0xff]   ;;  %v1123_v9 = vld [vmem:[#allocation7 + $0x30] sm:$0xff]   ;;  %v849_v12 = vld [vmem:[%s1343_s2] ss:$0 sm:$0xff] }
  0x4d   :  { %934 = vmatprep.subr.bf16.mxu0 %v1078_v24  ;;  %v1124_v10 = vld [vmem:[#allocation7 + $0x38] sm:$0xff]  }
  0x4e   :  { %955 = vmatpush3.bf16.msra.mxu1 %v1077_v23 }
  0x4f   :  { %956 = vmatprep.subr.bf16.mxu1 %v1080_v26 }
  0x50   :  { %935 = vmatpush3.bf16.msra.mxu0 %v1079_v25 }
  0x51   :  { %936 = vmatprep.subr.bf16.mxu0 %v1082_v28 }
  0x52   :  { %957 = vmatpush3.bf16.msra.mxu1 %v1081_v27 }
  0x53   :  { %958 = vmatprep.subr.bf16.mxu1 %v1084_v30 }
  0x54   :  { %937 = vmatpush3.bf16.msra.mxu0 %v1083_v29 }
  0x55   :  { %966 = vmatprep.subr.bf16.mxu0 %v1088_v35 }
  0x56   :  { %959 = vmatpush3.bf16.msra.mxu1 %v1087_v34 }
  0x57   :  { %578 = vmatmul.mubr.bf16.vlgmr.msra.gmra.mrb[0].mxu0 %v850_v32  ;;  %1006 = vmatprep.subr.bf16.mxu1 %v1228_v42 }
  0x58   :  { %967 = vmatpush3.bf16.msra.mxu0 %v1091_v39  ;;  %657 = vmatprep.mubr.bf16.mxu0 %v855_v61  ;;  %v913_v39 = vld [vmem:[%s1345_s4] ss:$0 sm:$0xff]  ;;  %s1195_s4 = scalar_lea.vmem %s840_s7, 128 }
  0x59   :  { %618 = vmatmul.mubr.bf16.vlgmr.msra.gmra.mrb[0].mxu1 %v852_v37  ;;  %968 = vmatprep.subr.bf16.mxu0 %v1093_v41  ;;  %v818_v37 = vlaneseq  ;;  %p1196_p10 = scmp.ne.s32.totalorder %s840_s7, %s1195_s4  ;;  %p1201_p12 = scmp.lt.s32.totalorder %s1195_s4, %s1195_s4 }
  0x5a   :  { %1007 = vmatpush3.bf16.msra.mxu1 %v1092_v40  ;;  %1022 = vmatprep.mubr.msk.bf16.mxu1 %vm1229_vm0, %v1228_v42 }
  0x5b   :  { %1008 = vmatprep.subr.bf16.mxu1 %v1228_v42  ;;  %v819_v38 = vand.u32 127, %v818_v37  ;;  %p1202_p13 = por %p1201_p12, %p1200_p11 }
  0x5c   :  { %969 = vmatpush3.bf16.msra.mxu0 %v1094_v43 }
  0x5d   :  { %970 = vmatprep.subr.bf16.mxu0 %v1096_v45  ;;  %vm820_vm1 = vcmp.lt.s32.totalorder %v819_v38, 10  ;;  %p1203_p0 = pnand %p1202_p13, %p1196_p10 }
  0x5e   :  { %1009 = vmatpush3.bf16.msra.mxu1 %v1095_v44 }
  0x5f   :  { %1010 = vmatprep.subr.bf16.mxu1 %v1228_v42 }
  0x60   :  { %971 = vmatpush3.bf16.msra.mxu0 %v1097_v46 }
  0x61   :  { %972 = vmatprep.subr.bf16.mxu0 %v1099_v48 }
  0x62   :  { %1011 = vmatpush3.bf16.msra.mxu1 %v1098_v47 }
  0x63   :  { %1012 = vmatprep.subr.bf16.mxu1 %v1228_v42 }
  0x64   :  { %973 = vmatpush3.bf16.msra.mxu0 %v1100_v49 }
  0x65   :  { %974 = vmatprep.subr.bf16.mxu0 %v1102_v50 }
  0x66   :  { %1013 = vmatpush3.bf16.msra.mxu1 %v1101_v51 }
  0x67   :  { %1014 = vmatprep.subr.bf16.mxu1 %v1228_v42 }
  0x68   :  { %975 = vmatpush3.bf16.msra.mxu0 %v1103_v52 }
  0x69   :  { %976 = vmatprep.subr.bf16.mxu0 %v1105_v53 }
  0x6a   :  { %1015 = vmatpush3.bf16.msra.mxu1 %v1104_v54 }
  0x6b   :  { %1016 = vmatprep.subr.bf16.mxu1 %v1228_v42 }
  0x6c   :  { %977 = vmatpush3.bf16.msra.mxu0 %v1106_v55 }
  0x6d   :  { %978 = vmatprep.subr.bf16.mxu0 %v1108_v56 }
  0x6e   :  { %1017 = vmatpush3.bf16.msra.mxu1 %v1107_v57 }
  0x6f   :  { %1018 = vmatprep.subr.bf16.mxu1 %v1228_v42 }
  0x70   :  { %979 = vmatpush3.bf16.msra.mxu0 %v1109_v58 }
  0x71   :  { %980 = vmatprep.subr.bf16.mxu0 %v1111_v62 }
  0x72   :  { %1019 = vmatpush3.bf16.msra.mxu1 %v1110_v60 }
  0x73   :  { %1020 = vmatprep.subr.bf16.mxu1 %v1228_v42 }
  0x74   :  { %981 = vmatpush3.bf16.msra.mxu0 %v1112_v63 }
  0x75   :  { %1026 = vmatprep.subr.bf16.mxu0 %v1228_v42 }
  0x76   :  { %1021 = vmatpush3.bf16.msra.mxu1 %v1115_v0 }
  0x77   :  { %658 = vmatmul.mubr.bf16.vlgmr.msra.gmra.mrb[4].mxu0 %v854_v1 }
  0x78   :  { %1042 = vmatprep.mubr.msk.bf16.mxu0 %vm1229_vm0, %v1228_v42  ;;  %1027 = vmatpush3.bf16.msra.mxu0 %v1117_v3 }
  0x79   :  { %1023 = vmatmul.mubr.bf16.vlgmr.msra.gmra.mrb[4].mxu1 %v1116_v2  ;;  %1028 = vmatprep.subr.bf16.mxu0 %v1228_v42 }
  0x7c   :  { %1029 = vmatpush3.bf16.msra.mxu0 %v1118_v4 }
  0x7d   :  { %1030 = vmatprep.subr.bf16.mxu0 %v1228_v42 }
  0x80   :  { %1031 = vmatpush3.bf16.msra.mxu0 %v1119_v5 }
  0x81   :  { %1032 = vmatprep.subr.bf16.mxu0 %v1228_v42 }
  0x84   :  { %1033 = vmatpush3.bf16.msra.mxu0 %v1120_v6 }
  0x85   :  { %1034 = vmatprep.subr.bf16.mxu0 %v1228_v42 }
  0x88   :  { %1035 = vmatpush3.bf16.msra.mxu0 %v1121_v7 }
  0x89   :  { %1036 = vmatprep.subr.bf16.mxu0 %v1228_v42 }
  0x8c   :  { %1037 = vmatpush3.bf16.msra.mxu0 %v1122_v8 }
  0x8d   :  { %1038 = vmatprep.subr.bf16.mxu0 %v1228_v42 }
  0x90   :  { %1039 = vmatpush3.bf16.msra.mxu0 %v1123_v9 }
  0x91   :  { %1040 = vmatprep.subr.bf16.mxu0 %v1228_v42 }
  0x94   :  { %1041 = vmatpush3.bf16.msra.mxu0 %v1124_v10 }
 0x12a   :  { %v938_v11 = vpop.f32.mrb[0].mxu0 }
 0x12b   :  { %v939_v13 = vpop.f32.mrb[1].mxu0 }
 0x12c   :  { %v940_v14 = vadd.f32 %v939_v13, %v938_v11  ;;  %v941_v15 = vpop.f32.mrb[2].mxu0  ;;  %v960_v16 = vpop.f32.mrb[0].mxu1 }
 0x12d   :  { %v942_v17 = vpop.f32.mrb[3].mxu0  ;;  %v961_v18 = vpop.f32.mrb[1].mxu1 }
 0x12e   :  { %v580_v19 = vadd.f32 %v940_v14, %v849_v12  ;;  %v962_v20 = vadd.f32 %v961_v18, %v960_v16  ;;  %v963_v21 = vpop.f32.mrb[2].mxu1 }
 0x12f   :  { %v964_v22 = vpop.f32.mrb[3].mxu1 }
 0x130   :  { %v620_v23 = vadd.f32 %v962_v20, %v580_v19 }
 0x14a   :  { %v982_v24 = vpop.f32.mrb[4].mxu0 }
 0x14b   :  { %v983_v25 = vpop.f32.mrb[5].mxu0 }
 0x14c   :  { %v984_v26 = vadd.f32 %v983_v25, %v982_v24  ;;  %v985_v27 = vpop.f32.mrb[6].mxu0  ;;  %v699_v28 = vpop.f32.mrb[4].mxu1 }
 0x14d   :  { %v986_v29 = vpop.f32.mrb[7].mxu0  ;;  %v1024_v30 = vpop.f32.mrb[5].mxu1 }
 0x14e   :  { %v660_v31 = vadd.f32 %v984_v26, %v620_v23  ;;  %v702_v32 = vpop.f32.mrb[6].mxu1 }
 0x14f   :  { %v1025_v33 = vpop.f32.mrb[7].mxu1 }
 0x150   :  { %v700_v34 = vadd.f32 %v699_v28, %v660_v31 }
 0x152   :  { %v705_v35 = vmax.f32 %v700_v34, 0.0 }
 0x154   :  { %v706_v36 = vpack.c.bf16 %v705_v35, %v705_v35 }
 0x156   :  { %1043 = vmatmul.mubr.bf16.vlgmr.msra.gmra.mrb[8].mxu0 %v706_v36 }
 0x229   :  { %v812_v40 = vpop.f32.mrb[8].mxu0 }
 0x22a   :  { %v813_v41 = vadd.f32 %v913_v39, %v812_v40  ;;  %v1044_v42 = vpop.f32.mrb[9].mxu0 }
 0x22b   :  { %v815_v43 = vpop.f32.mrb[10].mxu0 }
 0x22c   :  { %v1045_v44 = vpop.f32.mrb[11].mxu0  ;;  %v821_v45 = vsel %vm820_vm1, %v813_v41, -1e+30 }
 0x22d   :  { %822 = vmax.xlane.f32.xlu0 %v821_v45 }
 0x2ba   :  { %v823_v46 = vpop.xlane.xlu0 %822 }
 0x2bb   :  { %v824_v47 = vsub.f32 %v821_v45, %v823_v46 }
 0x2bd   :  { %v825_v48 = vmul.f32 1.442695, %v824_v47 }
 0x2bf   :  { %1125 = vpow2.f32 %v825_v48 }
 0x2c9   :  { %v1126_v49 = vpop.eup %1125 }
 0x2ca   :  { %827 = vadd.xlane.f32.xlu0 %v1126_v49 }
 0x357   :  { %v828_v50 = vpop.xlane.xlu0 %827 }
 0x358   :  { %1127 = vlog2.f32 %v828_v50 }
 0x362   :  { %v1128_v51 = vpop.eup %1127 }
 0x363   :  { %v830_v52 = vmul.f32 0.6931472, %v1128_v51 }
 0x365   :  { %v831_v53 = vsub.f32 %v824_v47, %v830_v52 }
 0x367   :  { %832 = vst [vmem:[#allocation8] sm:$0xff] %v831_v53 }
 0x368   :  { %1206 = shalt.err (!%p1203_p0)
}
 0x369   :  { %s1207_s10 = scalar_lea.hbm %s1346_s5, 128 }
 0x36a   :  { %p1208_p1 = scmp.ne.s32.totalorder %s1346_s5, %s1207_s10  ;;  %p1211_p2 = scmp.lt.u32.totalorder %s1207_s10, %s1346_s5 }
 0x36c   :  { %p1213_p3 = pnand %p1211_p2, %p1208_p1 }
 0x36e   :  { %1216 = shalt.err (!%p1213_p3)
}
 0x36f   :  { %842 = dma.vmem_to_hbm [thread:$0]  %s840_s7, 128, %s1346_s5, [#allocation4]  }
 0x370   :  { %1221 = dma.done.wait [#allocation4], 128  }
 0x371   :  { %1222 = vsyncadd [#allocation4], 4294967168 }
 0x372   :  { %846 = vsyncpa [#allocation3], 1 }
 0x373   :  { %847 = vsyncpa [#allocation6], 1 }
 0x374   :  { %848 = vsyncpa [#allocation4], 1 }

</bundles_post_ra>
